<compile_context>
chip_gen: v7x
topology: tpu7x:2x2x1
jax: 0.10.0
libtpu: 0.0.40
codegen_flags: <defaults>
</compile_context>

<pallas_src>
import jax
import jax.numpy as jnp
import numpy as np
from jax import lax
from jax.experimental import pallas as pl
from jax.experimental.pallas import tpu as pltpu

EPS = 1e-6      # module-level EPS in the PyTorch code
BN_EPS = 1e-5   # nn.BatchNorm1d default eps
LANE = 128


def _cdiv(a, b):
    return -(-a // b)


# ---------------------------------------------------------------------------
# In-kernel helpers (merged-lane layout: block is (rows, G, 3*Np); component v
# of a channel lives at lanes [v*Np, (v+1)*Np) -- static, lane-aligned slices).
# ---------------------------------------------------------------------------
def _comp_load(x_ref, v, Np):
    return x_ref[:, :, v * Np:(v + 1) * Np].astype(jnp.float32)


def _comp_store(o_ref, v, Np, val):
    o_ref[:, :, v * Np:(v + 1) * Np] = val


def _norm_feat(x_ref, Np, mode):
    # Accumulate sum of squares component-by-component so each component's
    # live range is short (re-read again before the stores).
    sq = None
    for v in range(3):
        xv = _comp_load(x_ref, v, Np)
        sq = xv * xv if sq is None else sq + xv * xv
    norm = jnp.sqrt(sq + EPS)
    feat = jnp.log(norm) if mode == "norm_log" else norm
    return norm, feat


def _apply_and_store(x_ref, o_ref, Np, norm, feat, a, bshift, mode):
    # Folded BN affine: feat*a + b'  (a = gamma*inv_std, b' = beta - mean*a).
    feat_bn = feat * a + bshift
    norm_bn = jnp.exp(feat_bn) if mode == "norm_log" else feat_bn
    d = norm + EPS
    r = pl.reciprocal(d, approx=True)       # EUP vrcp (idle slot)
    r = r * (2.0 - d * r)                   # one Newton step -> ~f32 accuracy
    scale = norm_bn * r
    od = o_ref.dtype
    for v in range(3):
        xv = _comp_load(x_ref, v, Np)       # re-read: keep live ranges short
        _comp_store(o_ref, v, Np, (xv * scale).astype(od))


# ---------------------------------------------------------------------------
# Resident single-pass kernel: whole (B, G, 3*Np) channel-group block in VMEM.
# One HBM read + one HBM write per element.
# ---------------------------------------------------------------------------
def _make_resident_kernel(mode, B, Np, N_real):
    inv_n = 1.0 / float(B * N_real)
    lane_mask_needed = (Np != N_real)

    def kernel(gb_ref, x_ref, o_ref):
        norm, feat = _norm_feat(x_ref, Np, mode)

        if lane_mask_needed:
            lane = lax.broadcasted_iota(jnp.int32, (1, 1, Np), 2)
            valid = lane < N_real
            feat_s = jnp.where(valid, feat, 0.0)
        else:
            feat_s = feat

        # Per-channel batch stats (reduce over B and lanes); two-pass centered
        # variance for numerical robustness (block is resident, so the extra
        # lane reduce is free at the HBM roofline).
        s1 = jnp.sum(jnp.sum(feat_s, axis=2, keepdims=True), axis=0, keepdims=True)
        mean = s1 * inv_n                                   # (1, G, 1)
        d0 = feat - mean
        if lane_mask_needed:
            d0 = jnp.where(valid, d0, 0.0)
        s2 = jnp.sum(jnp.sum(d0 * d0, axis=2, keepdims=True), axis=0, keepdims=True)
        var = s2 * inv_n                                    # biased (training) var
        inv_std = lax.rsqrt(var + BN_EPS)

        g = gb_ref[:, 0:1][None]                            # (1, G, 1)
        b = gb_ref[:, 1:2][None]
        a = inv_std * g
        bshift = b - mean * a

        _apply_and_store(x_ref, o_ref, Np, norm, feat, a, bshift, mode)

    return kernel


# ---------------------------------------------------------------------------
# Two-phase fallback (resident block too big for VMEM, e.g. large B*N on v7x):
# phase 1 accumulates per-channel sums over batch tiles; phase 2 re-reads x and
# applies the folded per-channel scale/shift. ~1.5x HBM traffic of resident.
# ---------------------------------------------------------------------------
def _make_stats_kernel(mode, TB, B_real, Np, N_real):
    lane_mask_needed = (Np != N_real)
    row_mask_needed = (B_real % TB != 0)

    def kernel(x_ref, s_ref):
        @pl.when(pl.program_id(1) == 0)
        def _init():
            s_ref[...] = jnp.zeros_like(s_ref)

        _, feat = _norm_feat(x_ref, Np, mode)

        mask = None
        if lane_mask_needed:
            lane = lax.broadcasted_iota(jnp.int32, (1, 1, Np), 2)
            mask = lane < N_real
        if row_mask_needed:
            row = lax.broadcasted_iota(jnp.int32, (TB, 1, 1), 0)
            rmask = (pl.program_id(1) * TB + row) < B_real
            mask = rmask if mask is None else (mask & rmask)
        feat_m = feat if mask is None else jnp.where(mask, feat, 0.0)

        s1 = jnp.sum(jnp.sum(feat_m, axis=2, keepdims=True), axis=0, keepdims=True)[0]
        s2 = jnp.sum(jnp.sum(feat_m * feat_m, axis=2, keepdims=True), axis=0,
                     keepdims=True)[0]
        s_ref[:, 0:1] += s1                                 # (G, 1)
        s_ref[:, 1:2] += s2

    return kernel


def _make_apply_kernel(mode, Np):
    def kernel(ab_ref, x_ref, o_ref):
        norm, feat = _norm_feat(x_ref, Np, mode)
        a = ab_ref[:, 0:1][None]                            # (1, G, 1)
        bshift = ab_ref[:, 1:2][None]
        _apply_and_store(x_ref, o_ref, Np, norm, feat, a, bshift, mode)
    return kernel


# ---------------------------------------------------------------------------
# Wrapper
# ---------------------------------------------------------------------------
def _vmem_budget_bytes():
    cap = None
    try:
        cap = int(pltpu.get_tpu_info().vmem_capacity_bytes)
    except Exception:
        cap = None
    try:
        kind = jax.devices()[0].device_kind.lower()
    except Exception:
        kind = ""
    if cap is None:
        cap = 64 * 1024 * 1024 if "v7" in kind else 128 * 1024 * 1024
    if "v7" in kind:                       # 64 MiB / TensorCore on v7x
        cap = min(cap, 64 * 1024 * 1024)
    cap = min(cap, 128 * 1024 * 1024)      # v5e / v6e physical
    return (cap * 3) // 4                  # headroom for compiler scratch


def vn_batch_norm(x, gamma, beta, mode="norm", *,
                  two_phase=None, batch_tile=None, vmem_budget_bytes=None):
    """VNBatchNorm forward (training-mode BN), dim=4 case: x [B, C, 3, N]."""
    assert mode in ("norm", "norm_log")
    B, C, V, N = x.shape
    assert V == 3, "axis 2 must be the 3-vector axis"

    # Channel-group size: 8 sublane-dense f32 rows, 16 for packed bf16.
    G = 16 if x.dtype == jnp.bfloat16 else 8
    num_groups = _cdiv(C, G)

    # Pad N up to a multiple of 128 so component slices / stores are lane-dense
    # (padded lanes are zero and masked out of the stats).
    Np = _cdiv(N, LANE) * LANE
    if Np != N:
        x = jnp.pad(x, ((0, 0), (0, 0), (0, 0), (0, Np - N)))
    x2 = x.reshape(B, C, 3 * Np)                    # free contiguous merge
    gb = jnp.stack([gamma.astype(jnp.float32),
                    beta.astype(jnp.float32)], axis=-1)      # (C, 2)

    budget = int(vmem_budget_bytes) if vmem_budget_bytes is not None \
        else _vmem_budget_bytes()
    itemsize = x.dtype.itemsize
    # Per batch-row bytes: double-buffered in+out (4*itemsize/elem) + ~3 f32 temps.
    row_bytes = G * 3 * Np * (4 * itemsize + 12)
    resident_bytes = B * row_bytes
    if two_phase is None:
        two_phase = resident_bytes > budget

    if not two_phase:
        out2 = pl.pallas_call(
            _make_resident_kernel(mode, B, Np, N),
            out_shape=jax.ShapeDtypeStruct((B, C, 3 * Np), x.dtype),
            grid=(num_groups,),
            in_specs=[
                pl.BlockSpec((G, 2), lambda c: (c, 0)),               # gamma|beta
                pl.BlockSpec((B, G, 3 * Np), lambda c: (0, c, 0)),    # x group
            ],
            out_specs=pl.BlockSpec((B, G, 3 * Np), lambda c: (0, c, 0)),
            compiler_params=pltpu.CompilerParams(
                dimension_semantics=("parallel",),
                vmem_limit_bytes=budget,
            ),
        )(gb, x2)
    else:
        TB = int(batch_tile) if batch_tile is not None \
            else max(1, min(B, budget // row_bytes))
        nb = _cdiv(B, TB)

        # Phase 1: per-channel sum / sum-of-squares over batch tiles.
        # TODO(synk): single-pass E[x^2]-E[x]^2 here; switch to shifted/Welford
        # accumulation if channel norms ever have mean >> std at huge B*N.
        stats = pl.pallas_call(
            _make_stats_kernel(mode, TB, B, Np, N),
            out_shape=jax.ShapeDtypeStruct((num_groups * G, 2), jnp.float32),
            grid=(num_groups, nb),
            in_specs=[pl.BlockSpec((TB, G, 3 * Np), lambda c, b: (b, c, 0))],
            out_specs=pl.BlockSpec((G, 2), lambda c, b: (c, 0)),
            compiler_params=pltpu.CompilerParams(
                dimension_semantics=("parallel", "arbitrary"),
                vmem_limit_bytes=budget,
            ),
        )(x2)

        # Tiny per-channel epilogue in plain JAX: fold BN into scale/shift.
        s1, s2 = stats[:C, 0], stats[:C, 1]
        n = float(B * N)
        mean = s1 / n
        var = jnp.maximum(s2 / n - mean * mean, 0.0)
        a = gamma.astype(jnp.float32) * lax.rsqrt(var + BN_EPS)
        bshift = beta.astype(jnp.float32) - mean * a
        ab = jnp.stack([a, bshift], axis=-1)                  # (C, 2)

        # Phase 2: re-read x tiles and apply.
        out2 = pl.pallas_call(
            _make_apply_kernel(mode, Np),
            out_shape=jax.ShapeDtypeStruct((B, C, 3 * Np), x.dtype),
            grid=(num_groups, nb),
            in_specs=[
                pl.BlockSpec((G, 2), lambda c, b: (c, 0)),
                pl.BlockSpec((TB, G, 3 * Np), lambda c, b: (b, c, 0)),
            ],
            out_specs=pl.BlockSpec((TB, G, 3 * Np), lambda c, b: (b, c, 0)),
            compiler_params=pltpu.CompilerParams(
                dimension_semantics=("parallel", "parallel"),
                vmem_limit_bytes=budget,
            ),
        )(ab, x2)

    out = out2.reshape(B, C, 3, Np)
    if Np != N:
        out = out[..., :N]
    return out


def vn_batch_norm_ref(x, gamma, beta, mode="norm"):
    """Pure-JAX f32 reference mirroring the PyTorch forward (training-mode BN)."""
    x = x.astype(jnp.float32)
    norm = jnp.sqrt(jnp.sum(x * x, axis=2) + EPS)             # (B, C, N)
    feat = jnp.log(norm) if mode == "norm_log" else norm
    mean = jnp.mean(feat, axis=(0, 2), keepdims=True)
    var = jnp.mean((feat - mean) ** 2, axis=(0, 2), keepdims=True)
    feat_bn = (feat - mean) / jnp.sqrt(var + BN_EPS)
    feat_bn = feat_bn * gamma[None, :, None] + beta[None, :, None]
    norm_bn = jnp.exp(feat_bn) if mode == "norm_log" else feat_bn
    return x / (norm[:, :, None, :] + EPS) * norm_bn[:, :, None, :]


if __name__ == "__main__":
    key = jax.random.PRNGKey(0)
    kx, kg, kb = jax.random.split(key, 3)

    # (B, C, N, dtype, extra kwargs)
    cases = [
        (2, 16, 128, jnp.float32, {}),                       # aligned, resident, G=8
        (2, 4, 16, jnp.float32, {}),                          # lane-pad + partial group
        (2, 12, 128, jnp.bfloat16, {}),                       # bf16 -> G=16
        (5, 8, 128, jnp.float32, dict(two_phase=True, batch_tile=2)),  # forced 2-phase
    ]
    for (B, C, N, dtype, kwargs) in cases:
        x = jax.random.normal(kx, (B, C, 3, N), dtype=jnp.float32).astype(dtype)
        gamma = 1.0 + 0.1 * jax.random.normal(kg, (C,), dtype=jnp.float32)
        beta = 0.1 * jax.random.normal(kb, (C,), dtype=jnp.float32)
        for mode in ("norm", "norm_log"):
            out = jax.block_until_ready(
                vn_batch_norm(x, gamma, beta, mode=mode, **kwargs))
            assert out.shape == x.shape and out.dtype == x.dtype
            ref = vn_batch_norm_ref(x, gamma, beta, mode=mode)
            if dtype == jnp.bfloat16:
                rtol, atol = 2e-2, 2e-2
            else:
                rtol, atol = 1e-4, 1e-5
            np.testing.assert_allclose(np.asarray(out).astype(np.float32),
                                       np.asarray(ref), rtol=rtol, atol=atol)

    print("KERNEL_OK")
</pallas_src>

<mosaic_0001>
module attributes {stable_mosaic.version = 11 : i64} {
  func.func @kernel(%arg0: i32, %arg1: memref<8x2xf32, #tpu.memory_space<vmem>>, %arg2: memref<2x8x384xf32, #tpu.memory_space<vmem>>, %arg3: memref<2x8x384xf32, #tpu.memory_space<vmem>>) attributes {dimension_semantics = [#tpu.dimension_semantics<parallel>], iteration_bounds = array<i64: 2>, scalar_prefetch = 0 : i64, scratch_operands = 0 : i64, tpu.core_type = #tpu.core_type<tc>, window_params = [{transform_indices = @transform_0, window_bounds = array<i64: 8, 2>}, {transform_indices = @transform_1, window_bounds = array<i64: 2, 8, 384>}, {transform_indices = @transform_2, window_bounds = array<i64: 2, 8, 384>}]} {
    %c0 = arith.constant 0 : index
    %c0_0 = arith.constant 0 : index
    %c0_1 = arith.constant 0 : index
    %0 = vector.load %arg2[%c0, %c0_0, %c0_1] : memref<2x8x384xf32, #tpu.memory_space<vmem>>, vector<2x8x128xf32>
    %1 = arith.mulf %0, %0 : vector<2x8x128xf32>
    %c0_2 = arith.constant 0 : index
    %c0_3 = arith.constant 0 : index
    %c128 = arith.constant 128 : index
    %2 = vector.load %arg2[%c0_2, %c0_3, %c128] : memref<2x8x384xf32, #tpu.memory_space<vmem>>, vector<2x8x128xf32>
    %3 = arith.mulf %2, %2 : vector<2x8x128xf32>
    %4 = arith.addf %1, %3 : vector<2x8x128xf32>
    %c0_4 = arith.constant 0 : index
    %c0_5 = arith.constant 0 : index
    %c256 = arith.constant 256 : index
    %5 = vector.load %arg2[%c0_4, %c0_5, %c256] : memref<2x8x384xf32, #tpu.memory_space<vmem>>, vector<2x8x128xf32>
    %6 = arith.mulf %5, %5 : vector<2x8x128xf32>
    %7 = arith.addf %4, %6 : vector<2x8x128xf32>
    %cst = arith.constant 9.99999997E-7 : f32
    %8 = vector.broadcast %cst : f32 to vector<2x8x128xf32>
    %9 = arith.addf %7, %8 : vector<2x8x128xf32>
    %10 = math.sqrt %9 : vector<2x8x128xf32>
    %cst_6 = arith.constant dense<0.000000e+00> : vector<2x8xf32>
    %11 = vector.multi_reduction <add>, %10, %cst_6 [2] : vector<2x8x128xf32> to vector<2x8xf32>
    %12 = vector.shape_cast %11 : vector<2x8xf32> to vector<2x8x1xf32>
    %cst_7 = arith.constant dense<0.000000e+00> : vector<8x1xf32>
    %13 = vector.multi_reduction <add>, %12, %cst_7 [0] : vector<2x8x1xf32> to vector<8x1xf32>
    %14 = vector.shape_cast %13 : vector<8x1xf32> to vector<1x8x1xf32>
    %cst_8 = arith.constant 3.906250e-03 : f32
    %15 = vector.broadcast %cst_8 : f32 to vector<1x8x1xf32>
    %16 = arith.mulf %14, %15 : vector<1x8x1xf32>
    %17 = vector.broadcast %16 : vector<1x8x1xf32> to vector<2x8x128xf32>
    %18 = arith.subf %10, %17 : vector<2x8x128xf32>
    %19 = arith.mulf %18, %18 : vector<2x8x128xf32>
    %cst_9 = arith.constant dense<0.000000e+00> : vector<2x8xf32>
    %20 = vector.multi_reduction <add>, %19, %cst_9 [2] : vector<2x8x128xf32> to vector<2x8xf32>
    %21 = vector.shape_cast %20 : vector<2x8xf32> to vector<2x8x1xf32>
    %cst_10 = arith.constant dense<0.000000e+00> : vector<8x1xf32>
    %22 = vector.multi_reduction <add>, %21, %cst_10 [0] : vector<2x8x1xf32> to vector<8x1xf32>
    %23 = vector.shape_cast %22 : vector<8x1xf32> to vector<1x8x1xf32>
    %cst_11 = arith.constant 3.906250e-03 : f32
    %24 = vector.broadcast %cst_11 : f32 to vector<1x8x1xf32>
    %25 = arith.mulf %23, %24 : vector<1x8x1xf32>
    %cst_12 = arith.constant 9.99999974E-6 : f32
    %26 = vector.broadcast %cst_12 : f32 to vector<1x8x1xf32>
    %27 = arith.addf %25, %26 : vector<1x8x1xf32>
    %28 = math.rsqrt %27 : vector<1x8x1xf32>
    %c0_13 = arith.constant 0 : index
    %c0_14 = arith.constant 0 : index
    %29 = vector.load %arg1[%c0_13, %c0_14] : memref<8x2xf32, #tpu.memory_space<vmem>>, vector<8x1xf32>
    %30 = vector.shape_cast %29 : vector<8x1xf32> to vector<1x8x1xf32>
    %c0_15 = arith.constant 0 : index
    %c1 = arith.constant 1 : index
    %31 = vector.load %arg1[%c0_15, %c1] : memref<8x2xf32, #tpu.memory_space<vmem>>, vector<8x1xf32>
    %32 = vector.shape_cast %31 : vector<8x1xf32> to vector<1x8x1xf32>
    %33 = arith.mulf %28, %30 : vector<1x8x1xf32>
    %34 = arith.mulf %16, %33 : vector<1x8x1xf32>
    %35 = arith.subf %32, %34 : vector<1x8x1xf32>
    %36 = vector.broadcast %33 : vector<1x8x1xf32> to vector<2x8x128xf32>
    %37 = arith.mulf %10, %36 : vector<2x8x128xf32>
    %38 = vector.broadcast %35 : vector<1x8x1xf32> to vector<2x8x128xf32>
    %39 = arith.addf %37, %38 : vector<2x8x128xf32>
    %cst_16 = arith.constant 9.99999997E-7 : f32
    %40 = vector.broadcast %cst_16 : f32 to vector<2x8x128xf32>
    %41 = arith.addf %10, %40 : vector<2x8x128xf32>
    %42 = tpu.reciprocal %41 {approx = true} : vector<2x8x128xf32> -> vector<2x8x128xf32>
    %43 = arith.mulf %41, %42 : vector<2x8x128xf32>
    %cst_17 = arith.constant 2.000000e+00 : f32
    %44 = vector.broadcast %cst_17 : f32 to vector<2x8x128xf32>
    %45 = arith.subf %44, %43 : vector<2x8x128xf32>
    %46 = arith.mulf %42, %45 : vector<2x8x128xf32>
    %47 = arith.mulf %39, %46 : vector<2x8x128xf32>
    %c0_18 = arith.constant 0 : index
    %c0_19 = arith.constant 0 : index
    %c0_20 = arith.constant 0 : index
    %48 = vector.load %arg2[%c0_18, %c0_19, %c0_20] : memref<2x8x384xf32, #tpu.memory_space<vmem>>, vector<2x8x128xf32>
    %49 = arith.mulf %48, %47 : vector<2x8x128xf32>
    %c0_21 = arith.constant 0 : index
    %c0_22 = arith.constant 0 : index
    %c0_23 = arith.constant 0 : index
    %50 = vector.load %arg3[%c0_21, %c0_22, %c0_23] : memref<2x8x384xf32, #tpu.memory_space<vmem>>, vector<2x8x128xf32>
    tpu.vector_store %arg3[%c0_21, %c0_22, %c0_23], %49 {strides = array<i32>} : memref<2x8x384xf32, #tpu.memory_space<vmem>>, vector<2x8x128xf32>,
    %c0_24 = arith.constant 0 : index
    %c0_25 = arith.constant 0 : index
    %c128_26 = arith.constant 128 : index
    %51 = vector.load %arg2[%c0_24, %c0_25, %c128_26] : memref<2x8x384xf32, #tpu.memory_space<vmem>>, vector<2x8x128xf32>
    %52 = arith.mulf %51, %47 : vector<2x8x128xf32>
    %c0_27 = arith.constant 0 : index
    %c0_28 = arith.constant 0 : index
    %c128_29 = arith.constant 128 : index
    %53 = vector.load %arg3[%c0_27, %c0_28, %c128_29] : memref<2x8x384xf32, #tpu.memory_space<vmem>>, vector<2x8x128xf32>
    tpu.vector_store %arg3[%c0_27, %c0_28, %c128_29], %52 {strides = array<i32>} : memref<2x8x384xf32, #tpu.memory_space<vmem>>, vector<2x8x128xf32>,
    %c0_30 = arith.constant 0 : index
    %c0_31 = arith.constant 0 : index
    %c256_32 = arith.constant 256 : index
    %54 = vector.load %arg2[%c0_30, %c0_31, %c256_32] : memref<2x8x384xf32, #tpu.memory_space<vmem>>, vector<2x8x128xf32>
    %55 = arith.mulf %54, %47 : vector<2x8x128xf32>
    %c0_33 = arith.constant 0 : index
    %c0_34 = arith.constant 0 : index
    %c256_35 = arith.constant 256 : index
    %56 = vector.load %arg3[%c0_33, %c0_34, %c256_35] : memref<2x8x384xf32, #tpu.memory_space<vmem>>, vector<2x8x128xf32>
    tpu.vector_store %arg3[%c0_33, %c0_34, %c256_35], %55 {strides = array<i32>} : memref<2x8x384xf32, #tpu.memory_space<vmem>>, vector<2x8x128xf32>,
    return
  }
  func.func @transform_0(%arg0: i32) -> (i32, i32) {
    %c0_i32 = arith.constant 0 : i32
    %c0_i32_0 = arith.constant 0 : i32
    return %arg0, %c0_i32 : i32, i32
  }
  func.func @transform_1(%arg0: i32) -> (i32, i32, i32) {
    %c0_i32 = arith.constant 0 : i32
    %c0_i32_0 = arith.constant 0 : i32
    %c0_i32_1 = arith.constant 0 : i32
    return %c0_i32, %arg0, %c0_i32_0 : i32, i32, i32
  }
  func.func @transform_2(%arg0: i32) -> (i32, i32, i32) {
    %c0_i32 = arith.constant 0 : i32
    %c0_i32_0 = arith.constant 0 : i32
    %c0_i32_1 = arith.constant 0 : i32
    return %c0_i32, %arg0, %c0_i32_0 : i32, i32, i32
  }
}

</mosaic_0001>

<bundles_post_ra>
// kernel: tpu_custom_call.1
= control target key start
LH: loop header
LB: loop body
LE: loop exit
PB: predicated region body
PF: predicated region fallthrough
CT: control target
= control target key end

     0   :  { %7 = vsyncpa [#allocation3], 0  ;;  %s905_s0 = inlined_call_operand.hbm [shape: f32[16,2], index: 0, kind: input, shape index: {}]   ;;  %s906_s1 = inlined_call_operand.hbm [shape: f32[2,16,384], index: 1, kind: input, shape index: {}]   ;;  %s907_s2 = inlined_call_operand.hbm [shape: f32[2,16,384], index: 2, kind: output, shape index: {}]  }
   0x1   :  { %9 = vsyncpa [#allocation3 + $0x1], 0 }
   0x2   :  { %10 = vsyncpa [#allocation6], 0 }
   0x3   :  { %12 = vsyncpa [#allocation6 + $0x1], 0 }
   0x4   :  { %13 = vsyncpa [#allocation4], 0 }
   0x5   :  { %15 = vsyncpa [#allocation4 + $0x1], 0  ;;  %s656_s9 = smov 0   ;;  %s658_s10 = smov 0  }
   0x6   :  { %s660_s11 = smov 0   ;;  %s662_s12 = smov 0  }
   0x7 LB: > { %s677_s13 = sadd.s32 4294967295, %s627_s12   ;;  %s409_s14 = sadd.s32 4294967294, %s627_s12   ;;  %s627_s12 = sphi %s662_s12, %s923_s12   ;;  %s623_s11 = sphi %s660_s11, %s922_s11   ;;  %s619_s10 = sphi %s658_s10, %s921_s10   ;;  %s615_s9 = sphi %s656_s9, %s920_s9  }
   0x8   : > { %s681_s15 = sadd.s32 1, %s627_s12   ;;  %s28_s16 = sadd.s32 1, %s623_s11 }
   0x9   : > { %s25_s17 = ssub.s32 %s627_s12, %s681_s15  ;;  %p35_p0 = scmp.ne.s32.totalorder %s623_s11, %s619_s10 }
   0xa   : > { %p26_p1 = scmp.eq.s32.totalorder %s25_s17, 0  ;;  %p36_p2 = scmp.eq.s32.totalorder %s627_s12, 0 }
   0xb   : > { %p41_p3 = scmp.ne.s32.totalorder %s619_s10, %s615_s9  ;;  %p42_p4 = scmp.eq.s32.totalorder %s677_s13, 0 }
   0xc   : > { %s693_s18 = scalar_select %p26_p1, %s623_s11, %s28_s16  }
   0xd   : > { %p695_p5 = por %p36_p2, %p35_p0  ;;  %p699_p6 = por %p42_p4, %p41_p3 }
   0xe   : > { %p91_p7 = scmp.eq.s32.totalorder %s677_s13, 1  ;;  %p97_p8 = scmp.eq.s32.totalorder %s409_s14, 1 }
   0xf   : > { %s911_s20 = scalar_select %p699_p6, 1, 0 }
  0x10   : > { %p441_p10 = scmp.lt.s32.totalorder %s627_s12, 2  ;;  %p706_p11 = por %p91_p7, %p35_p0 }
  0x11   : > { %p710_p12 = por %p97_p8, %p41_p3  ;;  %s715_s23 = sand.u32 1, %s623_s11  }
  0x12   : > { %s912_s21 = scalar_select %p706_p11, 1, 0 }
  0x13   : > { %s913_s22 = scalar_select %p710_p12, 1, 0 }
  0x14   : > { %s413_s24 = sshll.u32 %s627_s12, 7  ;;  %s412_s25 = sshll.u32 %s715_s23, 3 }
  0x15   : > { %s722_s28 = scalar_lea.hbm %s905_s0, %s413_s24  ;;  %s121_s29 = scalar_lea.vmem [#allocation2], %s412_s25 }
  0x16   : > { %s128_s30 = sshll.u32 %s121_s29, 4  ;;  %p726_p13 = pnand %p441_p10, %p695_p5  ;;  %s730_s30 = int_to_ptr.vmem [resolvable:$true] %s128_s30 }
  0x17   : > { %s420_s4 = smul.u32 48, %s715_s23  ;;  %s118_s5 = scalar_lea.sflag [#allocation3], %s715_s23 }
  0x18   : > { %s497_s6 = scalar_lea.hbm %s722_s28, 128  ;;  %p499_p1 = pneg %p726_p13 }
  0x19   : > { %p498_p0 = scmp.ne.s32.totalorder %s722_s28, %s497_s6  ;;  %s502_s14 = scalar_lea.hbm %s905_s0, 256 }
  0x1a   : > { %p503_p4 = scmp.lt.u32.totalorder %s722_s28, %s905_s0  ;;  %p504_p5 = scmp.lt.u32.totalorder %s502_s14, %s497_s6 }
  0x1b   : > { %p500_p2 = pnand %p499_p1, %p498_p0  ;;  %p506_p8 = scmp.lt.u32.totalorder %s497_s6, %s722_s28 }
  0x1c   : > { %p505_p7 = por %p504_p5, %p503_p4 }
  0x1d   : > { %p501_p3 = pneg %p500_p2 }
  0x1e   : > { %p507_p10 = por %p506_p8, %p505_p7 }
  0x20   : > { %p508_p9 = pnand %p507_p10, %p501_p3 }
  0x22   : > { %511 = shalt.err (!%p508_p9)
}
  0x23   : > { %s512_s19 = scalar_lea.vmem %s730_s30, 128  ;;  %s629_s24 = smov [#allocation2]  }
  0x24   : > { %p513_p0 = scmp.ne.s32.totalorder %s730_s30, %s512_s19  ;;  %s517_s25 = sshll.u32 %s629_s24, 4  ;;  %s518_s25 = int_to_ptr.vmem [resolvable:$false] %s517_s25 }
  0x25   : > { %s519_s26 = scalar_lea.vmem %s518_s25, 256  ;;  %p520_p11 = scmp.lt.s32.totalorder %s730_s30, %s518_s25 }
  0x26   : > { %p515_p2 = pnand %p513_p0, %p499_p1  ;;  %p521_p4 = scmp.lt.s32.totalorder %s519_s26, %s512_s19 }
  0x28   : > { %p516_p12 = pneg %p515_p2  ;;  %p522_p5 = por %p521_p4, %p520_p11 }
  0x2a   : > { %p523_p7 = pnand %p522_p5, %p516_p12 }
  0x2c   : > { %526 = shalt.err (!%p523_p7)
}
  0x2d   : > { %433 = dma.hbm_to_vmem [thread:$0]  (!%p726_p13), %s722_s28, 128, %s730_s30, %s118_s5  }
  0x2e   : > { %p415_p9 = scmp.ge.s32.totalorder %s627_s12, 1  ;;  %p154_p3 = scmp.lt.s32.totalorder %s627_s12, 3 }
  0x2f   : > { %s421_s27 = smul.u32 384, %s627_s12  ;;  %s139_s29 = scalar_lea.vmem [#allocation5], %s420_s4 }
  0x30   : > { %s146_s6 = sshll.u32 %s139_s29, 4  ;;  %p764_p11 = pnand %p415_p9, %p154_p3  ;;  %s773_s6 = int_to_ptr.vmem [resolvable:$true] %s146_s6 }
  0x31   : > { %s771_s16 = scalar_lea.hbm %s906_s1, %s421_s27  ;;  %s136_s28 = scalar_lea.sflag [#allocation6], %s715_s23 }
  0x32   : > { %s527_s30 = scalar_lea.hbm %s771_s16, 768  ;;  %s532_s17 = scalar_lea.hbm %s906_s1, 1536 }
  0x33   : > { %p528_p12 = scmp.ne.s32.totalorder %s771_s16, %s527_s30  ;;  %p533_p0 = scmp.lt.u32.totalorder %s771_s16, %s906_s1 }
  0x34   : > { %p534_p2 = scmp.lt.u32.totalorder %s532_s17, %s527_s30  ;;  %p536_p5 = scmp.lt.u32.totalorder %s527_s30, %s771_s16 }
  0x35   : > { %p530_p8 = pnand %p528_p12, %p499_p1 }
  0x36   : > { %p535_p4 = por %p534_p2, %p533_p0 }
  0x37   : > { %p531_p10 = pneg %p530_p8 }
  0x38   : > { %p537_p7 = por %p536_p5, %p535_p4 }
  0x3a   : > { %p538_p9 = pnand %p537_p7, %p531_p10 }
  0x3c   : > { %541 = shalt.err (!%p538_p9)
}
  0x3d   : > { %s542_s25 = scalar_lea.vmem %s773_s6, 768  ;;  %s630_s26 = smov [#allocation5]  }
  0x3e   : > { %p543_p3 = scmp.ne.s32.totalorder %s773_s6, %s542_s25  ;;  %s547_s27 = sshll.u32 %s630_s26, 4  ;;  %s548_s27 = int_to_ptr.vmem [resolvable:$false] %s547_s27 }
  0x3f   : > { %s549_s29 = scalar_lea.vmem %s548_s27, 1536  ;;  %p550_p6 = scmp.lt.s32.totalorder %s773_s6, %s548_s27 }
  0x40   : > { %p545_p12 = pnand %p543_p3, %p499_p1  ;;  %p551_p0 = scmp.lt.s32.totalorder %s549_s29, %s542_s25 }
  0x42   : > { %p546_p8 = pneg %p545_p12  ;;  %p552_p2 = por %p551_p0, %p550_p6 }
  0x44   : > { %p553_p4 = pnand %p552_p2, %p546_p8 }
  0x46   : > { %556 = shalt.err (!%p553_p4)
}
  0x47   : > { %s631_s8 = smov 768   ;;  %s632_s14 = smov 384  }
  0x48   : > { %s633_s30 = smov 24   ;;  %158 = sbr.rel (%p764_p11) target bundleno = 698 (0x2ba), region = 28 }
  0x49   : > { %436 = dma.hbm_to_vmem [thread:$0]  (!%p726_p13), %s771_s16, 768, %s773_s6, %s136_s28, %s631_s8, %s632_s14, %s633_s30  }
  0x4a   : > { %s804_s4 = sand.u32 (!%p764_p11), 1, %s619_s10   ;;  %p916_p6 = scmp.ne.s32.totalorder (!%p764_p11), %s911_s20, 0 }
  0x4b   : > { %s416_s5 = sshll.u32 (!%p764_p11), %s804_s4, 3  ;;  %s161_s17 = scalar_lea.sflag (!%p764_p11), [#allocation3], %s804_s4 }
  0x4c   : > { %s808_s19 = scalar_lea.vmem (!%p764_p11), [#allocation2], %s416_s5 }
  0x4f   : > { %602 = dma.done.wait (%p916_p6), %s161_s17, 128  }
  0x50   : > { %604 = vsyncadd (%p916_p6), %s161_s17, 4294967168  ;;  %s422_s23 = smul.u32 48, %s804_s4  ;;  %s170_s3 = scalar_lea.sflag [#allocation6], %s804_s4 }
  0x52   : > { %s173_s6 = scalar_lea.vmem [#allocation5], %s422_s23 }
  0x53   : > { %606 = dma.done.wait (%p916_p6), %s170_s3, 768  }
  0x54   : > { %608 = vsyncadd (%p916_p6), %s170_s3, 4294966528  ;;  %v822_v0 = vld [vmem:[%s173_s6] sm:$0xff]  ;;  %v824_v1 = vld [vmem:[%s173_s6 + $0x8] sm:$0xff]  ;;  %v634_v36 = vmov 0   ;;  %v635_v42 = vmov 1   ;;  %s636_s20 = smov 1  }
  0x55   : > { %v826_v2 = vld [vmem:[%s173_s6 + $0x10] sm:$0xff]  ;;  %v201_v3 = vmul.f32 %v822_v0, %v822_v0  ;;  %v205_v4 = vmul.f32 %v824_v1, %v824_v1  ;;  %v834_v6 = vld [vmem:[%s173_s6 + $0x18] sm:$0xff]  ;;  %v836_v7 = vld [vmem:[%s173_s6 + $0x20] sm:$0xff]  ;;  %484 = vset.pattern.permute.xlu1 %v634_v36  ;;  %486 = vset.pattern.permute.xlu0 %v635_v42  ;;  %s198_s7 = scalar_lea.vmem [#allocation7], %s422_s23  ;;  %s423_s28 = smul.u32 384, %s677_s13 }
  0x56   : > { %v211_v5 = vmul.f32 %v826_v2, %v826_v2  ;;  %v838_v8 = vld [vmem:[%s173_s6 + $0x28] sm:$0xff]  ;;  %v202_v9 = vmul.f32 %v834_v6, %v834_v6  ;;  %v206_v10 = vmul.f32 %v836_v7, %v836_v7  ;;  %s313_s16 = sshll.u32 %s198_s7, 4  ;;  %s300_s26 = scalar_lea.sflag [#allocation4], %s804_s4  ;;  %s850_s16 = int_to_ptr.vmem [resolvable:$true] %s313_s16 }
  0x57   : > { %v212_v11 = vmul.f32 %v838_v8, %v838_v8  ;;  %v207_v12 = vadd.f32 %v205_v4, %v201_v3  ;;  %v249_v43 = vld [vmem:[%s808_s19] sm:$0xff]  ;;  %s859_s13 = scalar_lea.hbm %s907_s2, %s423_s28  ;;  %s557_s27 = scalar_lea.vmem %s850_s16, 768 }
  0x58   : > { %v208_v13 = vadd.f32 %v206_v10, %v202_v9  ;;  %p558_p13 = scmp.ne.s32.totalorder %s850_s16, %s557_s27  ;;  %p917_p1 = scmp.ne.s32.totalorder %s912_s21, 0 }
  0x59   : > { %v213_v14 = vadd.f32 %v211_v5, %v207_v12  ;;  %s637_s29 = smov [#allocation7]  }
  0x5a   : > { %v214_v15 = vadd.f32 %v212_v11, %v208_v13  ;;  %p559_p11 = pnand %p558_p13, %p917_p1  ;;  %s561_s8 = sshll.u32 %s637_s29, 4  ;;  %s562_s8 = int_to_ptr.vmem [resolvable:$false] %s561_s8 }
  0x5b   : > { %v215_v16 = vadd.f32 1e-06, %v213_v14  ;;  %s563_s14 = scalar_lea.vmem %s562_s8, 1536  ;;  %p564_p5 = scmp.lt.s32.totalorder %s850_s16, %s562_s8 }
  0x5c   : > { %v216_v17 = vadd.f32 1e-06, %v214_v15  ;;  %p560_p10 = pneg %p559_p11  ;;  %p565_p7 = scmp.lt.s32.totalorder %s563_s14, %s557_s27 }
  0x5d   : > { %487 = vrsqrt.f32 %v215_v16  ;;  %vm219_vm0 = vcmp.eq.f32.partialorder %v215_v16, inf  ;;  %v222_v19 = vand.u32 2147483648, %v215_v16  ;;  %vm221_vm1 = vcmp.eq.f32.partialorder %v215_v16, 0.0 }
  0x5e   : > { %489 = vrsqrt.f32 %v216_v17  ;;  %vm226_vm2 = vcmp.eq.f32.partialorder %v216_v17, inf  ;;  %v229_v23 = vand.u32 2147483648, %v216_v17  ;;  %vm228_vm3 = vcmp.eq.f32.partialorder %v216_v17, 0.0  ;;  %p566_p9 = por %p565_p7, %p564_p5 }
  0x60   : > { %p567_p3 = pnand %p566_p9, %p560_p10 }
  0x67   : > { %v488_v18 = vpop.eup %487 }
  0x68   : > { %v490_v20 = vpop.eup %489  ;;  %v218_v21 = vmul.f32 %v488_v18, %v215_v16 }
  0x69   : > { %v225_v22 = vmul.f32 %v490_v20, %v216_v17 }
  0x6a   : > { %v220_v24 = vsel %vm219_vm0, %v215_v16, %v218_v21 }
  0x6b   : > { %v223_v25 = vsel %vm221_vm1, %v222_v19, %v220_v24  ;;  %v227_v26 = vsel %vm226_vm2, %v216_v17, %v225_v22 }
  0x6c   : > { %231 = vadd.xlane.f32.xlu0 %v223_v25  ;;  %v230_v27 = vsel %vm228_vm3, %v229_v23, %v227_v26  ;;  %v271_v49 = vadd.f32 1e-06, %v223_v25 }
  0x6d   : > { %v272_v50 = vadd.f32 1e-06, %v230_v27 }
  0x70   : > { %233 = vadd.xlane.f32.xlu0 %v230_v27 }
  0xf9   : > { %v232_v28 = vpop.xlane.xlu0 %231 }
  0xfd   : > { %v234_v29 = vpop.xlane.xlu0 %233 }
  0xfe   : > { %v235_v30 = vadd.f32 %v234_v29, %v232_v28 }
 0x100   : > { %v236_v31 = vmul.f32 0.00390625, %v235_v30 }
 0x102   : > { %v237_v32 = vsub.f32 %v223_v25, %v236_v31  ;;  %v238_v34 = vsub.f32 %v230_v27, %v236_v31 }
 0x104   : > { %v239_v33 = vmul.f32 %v237_v32, %v237_v32  ;;  %v240_v35 = vmul.f32 %v238_v34, %v238_v34 }
 0x106   : > { %241 = vadd.xlane.f32.xlu1 %v239_v33 }
 0x10a   : > { %243 = vadd.xlane.f32.xlu1 %v240_v35 }
 0x193   : > { %v242_v37 = vpop.xlane.xlu1 %241 }
 0x197   : > { %v244_v38 = vpop.xlane.xlu1 %243 }
 0x198   : > { %v245_v39 = vadd.f32 %v244_v38, %v242_v37 }
 0x19a   : > { %v246_v40 = vmul.f32 0.00390625, %v245_v39 }
 0x19c   : > { %v247_v41 = vadd.f32 1e-05, %v246_v40 }
 0x19e   : > { %491 = vrsqrt.f32 %v247_v41 }
 0x19f   : > { %493 = vrcp.f32 %v271_v49 }
 0x1a0   : > { %495 = vrcp.f32 %v272_v50 }
 0x1a8   : > { %v492_v44 = vpop.eup %491 }
 0x1a9   : > { %v250_v45 = vmul.f32 %v492_v44, %v249_v43  ;;  %v494_v51 = vpop.eup %493 }
 0x1aa   : > { %v496_v52 = vpop.eup %495  ;;  %v275_v54 = vmul.f32 %v494_v51, %v271_v49 }
 0x1ab   : > { %259 = vperm.xlu1 %484, %v250_v45   ;;  %v251_v46 = vmul.f32 %v250_v45, %v236_v31  ;;  %v276_v53 = vmul.f32 %v496_v52, %v272_v50 }
 0x1ac   : > { %v277_v56 = vsub.f32 2.0, %v275_v54 }
 0x1ad   : > { %253 = vrot.lane.b32.xlu0 %v251_v46, %s636_s20  ;;  %v278_v55 = vsub.f32 2.0, %v276_v53 }
 0x1ae   : > { %v279_v61 = vmul.f32 %v494_v51, %v277_v56 }
 0x1af   : > { %485 = vset.pattern.permute.xlu1 %v635_v42  ;;  %v280_v60 = vmul.f32 %v496_v52, %v278_v55 }
 0x21f   : > { %v254_v47 = vpop.permute.xlu0 %253 }
 0x220   : > { %v256_v48 = vsub.f32 %v249_v43, %v254_v47 }
 0x222   : > { %266 = vperm.xlu1 %485, %v256_v48  }
 0x22a   : > { %v260_v57 = vpop.permute.xlu1 %259 }
 0x22b   : > { %v262_v58 = vmul.f32 %v260_v57, %v223_v25  ;;  %v263_v59 = vmul.f32 %v260_v57, %v230_v27 }
 0x2a1   : > { %v267_v62 = vpop.permute.xlu1 %266 }
 0x2a2   : > { %v269_v63 = vadd.f32 %v267_v62, %v262_v58  ;;  %v270_v3 = vadd.f32 %v267_v62, %v263_v59 }
 0x2a4   : > { %v281_v4 = vmul.f32 %v279_v61, %v269_v63  ;;  %v282_v5 = vmul.f32 %v280_v60, %v270_v3 }
 0x2a6   : > { %v283_v9 = vmul.f32 %v281_v4, %v822_v0  ;;  %v284_v10 = vmul.f32 %v282_v5, %v834_v6  ;;  %v289_v11 = vmul.f32 %v281_v4, %v824_v1  ;;  %v290_v12 = vmul.f32 %v282_v5, %v836_v7 }
 0x2a7   : > { %v295_v13 = vmul.f32 %v281_v4, %v826_v2  ;;  %v296_v14 = vmul.f32 %v282_v5, %v838_v8 }
 0x2a8   : > { %285 = vst [vmem:[%s198_s7] sm:$0xff] %v283_v9  ;;  %286 = vst [vmem:[%s198_s7 + $0x18] sm:$0xff] %v284_v10 }
 0x2a9   : > { %291 = vst [vmem:[%s198_s7 + $0x8] sm:$0xff] %v289_v11  ;;  %292 = vst [vmem:[%s198_s7 + $0x20] sm:$0xff] %v290_v12 }
 0x2aa   : > { %297 = vst [vmem:[%s198_s7 + $0x10] sm:$0xff] %v295_v13  ;;  %298 = vst [vmem:[%s198_s7 + $0x28] sm:$0xff] %v296_v14 }
 0x2ab   : > { %570 = shalt.err (!%p567_p3)
}
 0x2ac   : > { %s571_s30 = scalar_lea.hbm %s859_s13, 768  ;;  %s575_s19 = scalar_lea.hbm %s907_s2, 1536 }
 0x2ad   : > { %p572_p12 = scmp.ne.s32.totalorder %s859_s13, %s571_s30  ;;  %p576_p2 = scmp.lt.u32.totalorder %s859_s13, %s907_s2 }
 0x2ae   : > { %p577_p4 = scmp.lt.u32.totalorder %s575_s19, %s571_s30  ;;  %p579_p13 = scmp.lt.u32.totalorder %s571_s30, %s859_s13 }
 0x2af   : > { %p573_p8 = pnand %p572_p12, %p917_p1 }
 0x2b0   : > { %p578_p6 = por %p577_p4, %p576_p2 }
 0x2b1   : > { %p574_p0 = pneg %p573_p8 }
 0x2b2   : > { %p580_p11 = por %p579_p13, %p578_p6 }
 0x2b4   : > { %p581_p10 = pnand %p580_p11, %p574_p0 }
 0x2b6   : > { %584 = shalt.err (!%p581_p10)
}
 0x2b7   : > { %s638_s6 = smov 384   ;;  %s639_s20 = smov 768  }
 0x2b8   : > { %s640_s7 = smov 24  }
 0x2b9   : > { %428 = dma.vmem_to_hbm [thread:$0]  (%p917_p1), %s850_s16, 768, %s859_s13, %s300_s26, %s638_s6, %s639_s20, %s640_s7  }
 0x2ba PF: > { %s328_s28 = sand.u32 1, %s615_s9   ;;  %p918_p5 = scmp.ne.s32.totalorder %s913_s22, 0 }
 0x2bb   : > { %p919_p7 = scmp.ge.s32.totalorder %s627_s12, 2  ;;  %s329_s24 = scalar_lea.sflag [#allocation4], %s328_s28 }
 0x2bd   : > { %p438_p9 = pnand %p919_p7, %p918_p5 }
 0x2bf   : > { %610 = dma.done.wait (!%p438_p9), %s329_s24, 768  }
 0x2c0   : > { %612 = vsyncadd (!%p438_p9), %s329_s24, 4294966528  ;;  %p18_p3 = scmp.ge.s32.totalorder %s681_s15, 4   ;;  %s920_s9 = smov %s619_s10 }
 0x2c1   : > { %s921_s10 = smov %s623_s11  ;;  %s922_s11 = smov %s693_s18 }
 0x2c2   : > { %s923_s12 = smov %s681_s15  ;;  %20 = sbr.rel (!%p18_p3) target bundleno = 7 (0x7), region = 86 }
 0x2c9   :  { %334 = vsyncpa [#allocation3], 1 }
 0x2ca   :  { %336 = vsyncpa [#allocation3 + $0x1], 1 }
 0x2cb   :  { %337 = vsyncpa [#allocation6], 1 }
 0x2cc   :  { %339 = vsyncpa [#allocation6 + $0x1], 1 }
 0x2cd   :  { %340 = vsyncpa [#allocation4], 1 }
 0x2ce   :  { %342 = vsyncpa [#allocation4 + $0x1], 1 }

</bundles_post_ra>
